<compile_context>
chip_gen: v6e
topology: v6e:2x2x1
jax: 0.10.0
libtpu: 0.0.40
codegen_flags: <defaults>
</compile_context>

<pallas_src>
import jax
import jax.numpy as jnp
from jax.experimental import pallas as pl
from jax.experimental.pallas import tpu as pltpu


def discrete_model_kernel(x_ref, w1_ref, b1_ref, w2_ref, b2_ref, o_ref):
    # x_ref : (1, B)        batch on the lane axis
    # w1_ref: (1, H)        linear1.weight, reshaped (H, 1) -> (1, H)
    # b1_ref: (1, H)        linear1.bias
    # w2_ref: (n_out, H)    linear2.weight (PyTorch-native layout)
    # b2_ref: (n_out, 1)    linear2.bias
    # o_ref : (n_out, B)    softmax over the batch (lane) axis, lane-major
    n_out, B = o_ref.shape

    # Fold linear2 o linear1 (exact: no nonlinearity between them) on the VPU/XLU:
    #   W[j] = sum_k w2[j, k] * w1[k],   c[j] = sum_k w2[j, k] * b1[k] + b2[j]
    w2 = w2_ref[...]                                                      # (n_out, H)
    W_col = jnp.sum(w2 * w1_ref[...], axis=-1, keepdims=True)             # (n_out, 1)
    c_col = jnp.sum(w2 * b1_ref[...], axis=-1, keepdims=True) + b2_ref[...]

    # Single broadcast FMA: y[j, :] = W[j] * x + c[j]
    x_b = jnp.broadcast_to(x_ref[...], (n_out, B))                        # sublane bcast
    y = W_col * x_b + c_col                                               # (n_out, B)

    # Numerically stable softmax over the batch dimension (= lane axis here).
    m = jnp.max(y, axis=-1, keepdims=True)                                # (n_out, 1)
    e = jnp.exp(y - m)                                                    # (n_out, B)
    s = jnp.sum(e, axis=-1, keepdims=True)                                # (n_out, 1)
    o_ref[...] = e * pl.reciprocal(s, approx=False)


@jax.jit
def discrete_model(x, w1, b1, w2, b2):
    """Forward of DiscreteModel with parameters in PyTorch nn.Linear layout.

    x : (B, 1) float32
    w1: (hidden, 1), b1: (hidden,)        -- linear1.weight / linear1.bias
    w2: (n_out, hidden), b2: (n_out,)     -- linear2.weight / linear2.bias

    Returns the LANE-MAJOR result (n_out, B): row j is the softmax-over-batch of
    output j, i.e. the PyTorch module's output transposed.  Keeping the kernel's
    native layout avoids an extra XLA transpose dispatch; use
    discrete_model_torch_layout for strict (B, n_out) output.
    """
    B = x.shape[0]
    hidden = w1.shape[0]
    n_out = w2.shape[0]

    # Contiguous reshapes only (layout bitcasts) - no transposes, no copies.
    x_row = x.reshape(1, B)
    w1_row = w1.reshape(1, hidden)
    b1_row = b1.reshape(1, hidden)
    b2_col = b2.reshape(n_out, 1)

    return pl.pallas_call(
        discrete_model_kernel,
        out_shape=jax.ShapeDtypeStruct((n_out, B), jnp.float32),
        in_specs=[pl.BlockSpec(memory_space=pltpu.MemorySpace.VMEM)] * 5,
        out_specs=pl.BlockSpec(memory_space=pltpu.MemorySpace.VMEM),
    )(x_row, w1_row, b1_row, w2, b2_col)


@jax.jit
def discrete_model_torch_layout(x, w1, b1, w2, b2):
    # Strict (B, n_out) output like the PyTorch module.  The transpose is one extra
    # XLA op; prefer the lane-major entry point when the consumer allows it.
    return discrete_model(x, w1, b1, w2, b2).T


def reference(x, w1, b1, w2, b2):
    h = x @ w1.T + b1
    y = h @ w2.T + b2
    return jax.nn.softmax(y, axis=0)


if __name__ == "__main__":
    key = jax.random.PRNGKey(0)
    k_x, k_w1, k_b1, k_w2, k_b2 = jax.random.split(key, 5)

    batch, in_features, hidden, num_outputs = 8, 1, 10, 2

    # Deterministic inputs / parameters (PyTorch-native shapes & default-like init).
    x = jax.random.normal(k_x, (batch, in_features), dtype=jnp.float32)
    bound1 = 1.0 / (in_features ** 0.5)
    w1 = jax.random.uniform(k_w1, (hidden, in_features), jnp.float32, -bound1, bound1)
    b1 = jax.random.uniform(k_b1, (hidden,), jnp.float32, -bound1, bound1)
    bound2 = 1.0 / (hidden ** 0.5)
    w2 = jax.random.uniform(k_w2, (num_outputs, hidden), jnp.float32, -bound2, bound2)
    b2 = jax.random.uniform(k_b2, (num_outputs,), jnp.float32, -bound2, bound2)

    ref = reference(x, w1, b1, w2, b2)                      # (batch, num_outputs)

    # Primary (performant) lane-major path: one pallas_call, no surrounding XLA ops.
    out_lm = discrete_model(x, w1, b1, w2, b2)              # (num_outputs, batch)
    jax.block_until_ready(out_lm)
    assert out_lm.shape == (num_outputs, batch)
    assert jnp.allclose(out_lm, ref.T, atol=1e-5, rtol=1e-5), "lane-major mismatch vs reference"
    # softmax over the batch dimension: each output's probabilities sum to 1.
    assert jnp.allclose(jnp.sum(out_lm, axis=1), jnp.ones((num_outputs,)), atol=1e-5)

    # Compatibility path with the exact PyTorch output layout.
    out_bt = discrete_model_torch_layout(x, w1, b1, w2, b2)
    jax.block_until_ready(out_bt)
    assert out_bt.shape == (batch, num_outputs)
    assert jnp.allclose(out_bt, ref, atol=1e-5, rtol=1e-5), "torch-layout mismatch vs reference"

    print("KERNEL_OK")
</pallas_src>

<mosaic_0001>
module attributes {stable_mosaic.version = 11 : i64} {
  func.func @discrete_model_kernel(%arg0: memref<1x8xf32, #tpu.memory_space<vmem>>, %arg1: memref<1x10xf32, #tpu.memory_space<vmem>>, %arg2: memref<1x10xf32, #tpu.memory_space<vmem>>, %arg3: memref<2x10xf32, #tpu.memory_space<vmem>>, %arg4: memref<2x1xf32, #tpu.memory_space<vmem>>, %arg5: memref<2x8xf32, #tpu.memory_space<vmem>>) attributes {dimension_semantics = [], scalar_prefetch = 0 : i64, scratch_operands = 0 : i64, tpu.core_type = #tpu.core_type<tc>} {
    %c0 = arith.constant 0 : index
    %c0_0 = arith.constant 0 : index
    %0 = vector.load %arg3[%c0, %c0_0] : memref<2x10xf32, #tpu.memory_space<vmem>>, vector<2x10xf32>
    %c0_1 = arith.constant 0 : index
    %c0_2 = arith.constant 0 : index
    %1 = vector.load %arg1[%c0_1, %c0_2] : memref<1x10xf32, #tpu.memory_space<vmem>>, vector<1x10xf32>
    %2 = vector.broadcast %1 : vector<1x10xf32> to vector<2x10xf32>
    %3 = arith.mulf %0, %2 : vector<2x10xf32>
    %cst = arith.constant dense<0.000000e+00> : vector<2xf32>
    %4 = vector.multi_reduction <add>, %3, %cst [1] : vector<2x10xf32> to vector<2xf32>
    %5 = vector.shape_cast %4 : vector<2xf32> to vector<2x1xf32>
    %c0_3 = arith.constant 0 : index
    %c0_4 = arith.constant 0 : index
    %6 = vector.load %arg2[%c0_3, %c0_4] : memref<1x10xf32, #tpu.memory_space<vmem>>, vector<1x10xf32>
    %7 = vector.broadcast %6 : vector<1x10xf32> to vector<2x10xf32>
    %8 = arith.mulf %0, %7 : vector<2x10xf32>
    %cst_5 = arith.constant dense<0.000000e+00> : vector<2xf32>
    %9 = vector.multi_reduction <add>, %8, %cst_5 [1] : vector<2x10xf32> to vector<2xf32>
    %10 = vector.shape_cast %9 : vector<2xf32> to vector<2x1xf32>
    %c0_6 = arith.constant 0 : index
    %c0_7 = arith.constant 0 : index
    %11 = vector.load %arg4[%c0_6, %c0_7] : memref<2x1xf32, #tpu.memory_space<vmem>>, vector<2x1xf32>
    %12 = arith.addf %10, %11 : vector<2x1xf32>
    %c0_8 = arith.constant 0 : index
    %c0_9 = arith.constant 0 : index
    %13 = vector.load %arg0[%c0_8, %c0_9] : memref<1x8xf32, #tpu.memory_space<vmem>>, vector<1x8xf32>
    %14 = vector.shape_cast %13 : vector<1x8xf32> to vector<1x8xf32>
    %15 = vector.broadcast %14 : vector<1x8xf32> to vector<2x8xf32>
    %16 = vector.broadcast %5 : vector<2x1xf32> to vector<2x8xf32>
    %17 = arith.mulf %16, %15 : vector<2x8xf32>
    %18 = vector.broadcast %12 : vector<2x1xf32> to vector<2x8xf32>
    %19 = arith.addf %17, %18 : vector<2x8xf32>
    %cst_10 = arith.constant dense<0xFF800000> : vector<2xf32>
    %20 = vector.multi_reduction <maximumf>, %19, %cst_10 [1] : vector<2x8xf32> to vector<2xf32>
    %21 = vector.shape_cast %20 : vector<2xf32> to vector<2x1xf32>
    %22 = vector.broadcast %21 : vector<2x1xf32> to vector<2x8xf32>
    %23 = arith.subf %19, %22 : vector<2x8xf32>
    %24 = math.exp %23 : vector<2x8xf32>
    %cst_11 = arith.constant dense<0.000000e+00> : vector<2xf32>
    %25 = vector.multi_reduction <add>, %24, %cst_11 [1] : vector<2x8xf32> to vector<2xf32>
    %26 = vector.shape_cast %25 : vector<2xf32> to vector<2x1xf32>
    %27 = tpu.reciprocal %26 : vector<2x1xf32> -> vector<2x1xf32>
    %28 = vector.broadcast %27 : vector<2x1xf32> to vector<2x8xf32>
    %29 = arith.mulf %24, %28 : vector<2x8xf32>
    %c0_12 = arith.constant 0 : index
    %c0_13 = arith.constant 0 : index
    %30 = vector.load %arg5[%c0_12, %c0_13] : memref<2x8xf32, #tpu.memory_space<vmem>>, vector<2x8xf32>
    tpu.vector_store %arg5[%c0_12, %c0_13], %29 {strides = array<i32>} : memref<2x8xf32, #tpu.memory_space<vmem>>, vector<2x8xf32>,
    return
  }
}

</mosaic_0001>

<bundles_post_ra>
// kernel: discrete_model.1
= control target key start
LH: loop header
LB: loop body
LE: loop exit
PB: predicated region body
PF: predicated region fallthrough
CT: control target
= control target key end

     0   :  { %vm30_vm0 = vcmask 74752   ;;  %s174_s0 = inlined_call_operand.vmem [shape: f32[1,8], index: 0, kind: input, shape index: {}]   ;;  %s175_s1 = inlined_call_operand.vmem [shape: f32[1,10], index: 1, kind: input, shape index: {}]   ;;  %s176_s2 = inlined_call_operand.vmem [shape: f32[1,10], index: 2, kind: input, shape index: {}]   ;;  %s177_s3 = inlined_call_operand.vmem [shape: f32[2,10], index: 3, kind: input, shape index: {}]   ;;  %s178_s4 = inlined_call_operand.vmem [shape: f32[2,1], index: 4, kind: input, shape index: {}]   ;;  %s179_s5 = inlined_call_operand.hbm [shape: f32[2,8], index: 5, kind: output, shape index: {}]  }
   0x1   :  { %v21_v0 = vld [vmem:[%s177_s3] sm:$0x3] }
   0x2   :  { %v89_v1 = vld [vmem:[%s176_s2] ss:$0 sm:$0xff] }
   0x3   :  { %v41_v2 = vmul.f32 %v89_v1, %v21_v0  ;;  %v88_v3 = vld [vmem:[%s175_s1] ss:$0 sm:$0xff] }
   0x4   :  { %10 = vsyncpa [#allocation3], 0  ;;  %v29_v4 = vmul.f32 %v88_v3, %v21_v0  ;;  %v121_v7 = vmov 0   ;;  %v45_v8 = vld [vmem:[%s178_s4] sm:$0x3]  ;;  %vm61_vm1 = vcmask 58368  }
   0x5   :  { %v42_v5 = vsel %vm30_vm0, %v41_v2, 0.0  ;;  %93 = vset.pattern.permute.xlu1 %v121_v7  ;;  %94 = vset.pattern.permute.xlu0 %v121_v7  ;;  %v90_v11 = vld [vmem:[%s174_s0] ss:$0 sm:$0xff]  ;;  %s122_s1 = smov [#allocation2]  }
   0x6   :  { %43 = vadd.xlane.f32.xlu0 %v42_v5  ;;  %v31_v6 = vsel %vm30_vm0, %v29_v4, 0.0  ;;  %s80_s0 = sshll.u32 %s122_s1, 4  ;;  %s81_s0 = int_to_ptr.vmem [resolvable:$true] %s80_s0 }
   0x7   :  { %s99_s4 = scalar_lea.vmem %s81_s0, 32  ;;  %p104_p1 = scmp.lt.s32.totalorder %s81_s0, %s81_s0 }
   0x8   :  { %p100_p0 = scmp.ne.s32.totalorder %s81_s0, %s99_s4  ;;  %p105_p2 = scmp.lt.s32.totalorder %s99_s4, %s99_s4 }
   0xa   :  { %32 = vadd.xlane.f32.xlu0 %v31_v6  ;;  %p106_p3 = por %p105_p2, %p104_p1 }
   0xc   :  { %p107_p4 = pnand %p106_p3, %p100_p0 }
  0x8f   :  { %v44_v9 = vpop.xlane.xlu0 %43 }
  0x90   :  { %v46_v10 = vadd.f32 %v45_v8, %v44_v9 }
  0x92   :  { %57 = vperm.xlu1 %93, %v46_v10  }
  0x93   :  { %v33_v12 = vpop.xlane.xlu0 %32 }
  0x94   :  { %v54_v13 = vmul.f32 %v90_v11, %v33_v12 }
 0x10d   :  { %v58_v14 = vpop.permute.xlu1 %57 }
 0x10e   :  { %v60_v15 = vadd.f32 %v58_v14, %v54_v13 }
 0x110   :  { %v62_v16 = vsel %vm61_vm1, %v60_v15, -inf }
 0x111   :  { %63 = vmax.xlane.f32.xlu1 %v62_v16 }
 0x19a   :  { %v64_v17 = vpop.xlane.xlu1 %63 }
 0x19b   :  { %v65_v18 = vsub.f32 %v60_v15, %v64_v17 }
 0x19d   :  { %v66_v19 = vmul.f32 1.442695, %v65_v18 }
 0x19f   :  { %95 = vpow2.f32 %v66_v19 }
 0x1ac   :  { %v96_v20 = vpop.eup %95 }
 0x1ad   :  { %v68_v21 = vsel %vm61_vm1, %v96_v20, 0.0 }
 0x1ae   :  { %69 = vadd.xlane.f32.xlu0 %v68_v21 }
 0x237   :  { %v70_v22 = vpop.xlane.xlu0 %69 }
 0x238   :  { %97 = vrcp.f32 %v70_v22 }
 0x245   :  { %v98_v23 = vpop.eup %97 }
 0x246   :  { %v72_v24 = vmul.f32 %v98_v23, %v96_v20 }
 0x248   :  { %73 = vst.msk [vmem:[#allocation2] sm:$0x3] %vm61_vm1, %v72_v24 }
 0x249   :  { %110 = shalt.err (!%p107_p4)
}
 0x24a   :  { %83 = dma.vmem_to_hbm [thread:$0]  %s81_s0, 32, %s179_s5, [#allocation3]  }
 0x24b   :  { %119 = dma.done.wait [#allocation3], 32  }
 0x24c   :  { %120 = vsyncadd [#allocation3], 4294967264 }
 0x24d   :  { %87 = vsyncpa [#allocation3], 1 }

</bundles_post_ra>
